<compile_context>
chip_gen: v6e
topology: v6e:2x2x1
jax: 0.10.0
libtpu: 0.0.40
codegen_flags: <defaults>
</compile_context>

<pallas_src>
import math

import jax
import jax.numpy as jnp
from jax.experimental import pallas as pl
from jax.experimental.pallas import tpu as pltpu


def _round_up(a, b):
    return ((a + b - 1) // b) * b


def _make_skeleton_conv_kernel(n, k_taps, stride, tl, c_in):
    win_len = (tl - 1) * stride + k_taps

    def kernel(x_ref, w_ref, b_ref, o_ref):
        # x_ref: (N, L_in_total, C_in)  -- resident padded input, channels last
        # w_ref: (K*C_in, C_out_pad)    -- fused, lane-padded weights
        # b_ref: (1, C_out_pad)
        # o_ref: (N, TL, C_out_pad)     -- lane-dense output tile
        j = pl.program_id(0)
        start = pl.multiple_of(j * (tl * stride), tl * stride)
        xw = x_ref[:, pl.ds(start, win_len), :]          # (N, win_len, C_in)

        # Build the im2col slab: concat the K shifted windows on the lane axis.
        cols = []
        for k in range(k_taps):                          # small static loop
            if stride == 1:
                cols.append(xw[:, k:k + tl, :])          # (N, TL, C_in)
            else:
                # TODO(synk): stride>1 path uses a strided value slice; it is
                # not exercised by the test below.
                cols.append(jax.lax.slice(
                    xw, (0, k, 0),
                    (n, k + stride * (tl - 1) + 1, c_in),
                    (1, stride, 1)))
        xcol = jnp.concatenate(cols, axis=-1)            # (N, TL, K*C_in)
        xcol = xcol.reshape(n * tl, k_taps * c_in)       # flatten N*TL -> M

        acc = jnp.dot(xcol, w_ref[...],
                      preferred_element_type=jnp.float32)  # (N*TL, C_out_pad)
        acc = acc + b_ref[...]                           # (1, C_out_pad) bcast
        o_ref[...] = acc.reshape(n, tl, -1).astype(o_ref.dtype)

    return kernel


def skeleton_conv_forward(x_ncl, weight_masked, bias, *, padding, stride=1):
    """x_ncl: (N, C_in, L) float32.  weight_masked: (C_out, C_in, K).
    bias: (C_out,).  Returns (N, C_out, L_out), matching
    F.conv1d(F.pad(x, (p, p), mode='reflect'), weight*mask, bias, stride)."""
    n, c_in, l = x_ncl.shape
    c_out, _, k = weight_masked.shape
    if padding > l - 1:
        raise ValueError("reflect padding requires padding <= L - 1")

    # Reflect padding (wrapper glue; fused by XLA under jit).
    if padding > 0:
        x_ncl = jnp.pad(x_ncl, ((0, 0), (0, 0), (padding, padding)),
                        mode="reflect")
    l_pad = l + 2 * padding
    l_out = (l_pad - k) // stride + 1

    # ---- tiling choices --------------------------------------------------
    c_out_pad = _round_up(c_out, 128)          # lane-dense output stores
    l_out_pad = _round_up(l_out, 8)
    tl = min(l_out_pad, 256)                   # L_out rows per grid step
    if l_out_pad // tl < 2 and l_out_pad >= 16:
        tl = _round_up(l_out_pad // 2, 8)      # >= 2 tiles (v7x has 2 TCs)
    l_out_pad = _round_up(l_out_pad, tl)
    num_tiles = l_out_pad // tl

    # Input rows needed by the (padded) output range; zero-pad the tail.
    l_need = (l_out_pad - 1) * stride + k
    l_in_total = max(l_pad, l_need)

    # ---- re-layout: channels last, fused taps, lane padding ---------------
    x_nlc = jnp.transpose(x_ncl, (0, 2, 1))    # (N, L_pad, C_in)
    if l_in_total > l_pad:
        x_nlc = jnp.pad(x_nlc, ((0, 0), (0, l_in_total - l_pad), (0, 0)))

    # w_flat[k*C_in + c, o] = weight_masked[o, c, k]
    w_flat = jnp.transpose(weight_masked, (2, 1, 0)).reshape(k * c_in, c_out)
    w_flat = jnp.pad(w_flat, ((0, 0), (0, c_out_pad - c_out)))
    b_pad = jnp.pad(bias, (0, c_out_pad - c_out)).reshape(1, c_out_pad)

    out_nlc = pl.pallas_call(
        _make_skeleton_conv_kernel(n, k, stride, tl, c_in),
        out_shape=jax.ShapeDtypeStruct((n, l_out_pad, c_out_pad), x_nlc.dtype),
        grid_spec=pltpu.PrefetchScalarGridSpec(
            num_scalar_prefetch=0,
            grid=(num_tiles,),
            in_specs=[
                pl.BlockSpec((n, l_in_total, c_in), lambda j: (0, 0, 0)),
                pl.BlockSpec((k * c_in, c_out_pad), lambda j: (0, 0)),
                pl.BlockSpec((1, c_out_pad), lambda j: (0, 0)),
            ],
            out_specs=pl.BlockSpec((n, tl, c_out_pad), lambda j: (0, j, 0)),
        ),
        compiler_params=pltpu.CompilerParams(
            dimension_semantics=("parallel",)),
    )(x_nlc, w_flat, b_pad)

    # Trim lane / L padding and return PyTorch NCW layout.
    out_nlc = out_nlc[:, :l_out, :c_out]
    return jnp.transpose(out_nlc, (0, 2, 1))   # (N, C_out, L_out)


def build_skeleton_params(key, neighbour_list, in_channels, out_channels,
                          kernel_size, joint_num):
    """Deterministically build (weight, mask, bias) following
    SkeletonConv.__init__: a (C_out, C_in, K) weight, a topology mask with 1s
    only on expanded neighbour channels, and a per-joint uniform bias
    (kaiming-uniform-style ranges, synthetic values)."""
    in_per_joint = in_channels // joint_num
    out_per_joint = out_channels // joint_num

    expanded_neighbour_list = []
    for neighbour in neighbour_list:
        expanded = []
        for j in neighbour:
            for i in range(in_per_joint):
                expanded.append(j * in_per_joint + i)
        expanded_neighbour_list.append(expanded)

    import numpy as np
    mask_np = np.zeros((out_channels, in_channels, kernel_size),
                       dtype=np.float32)
    for i, expanded in enumerate(expanded_neighbour_list):
        mask_np[out_per_joint * i:out_per_joint * (i + 1), expanded, :] = 1.0
    mask = jnp.asarray(mask_np)

    k_w, k_b = jax.random.split(key)
    weight = jnp.zeros((out_channels, in_channels, kernel_size),
                       dtype=jnp.float32)
    bias = jnp.zeros((out_channels,), dtype=jnp.float32)
    wkeys = jax.random.split(k_w, joint_num)
    bkeys = jax.random.split(k_b, joint_num)
    for i, expanded in enumerate(expanded_neighbour_list):
        fan_in = len(expanded) * kernel_size
        gain = math.sqrt(2.0 / (1.0 + 5.0))           # kaiming a=sqrt(5)
        w_bound = gain * math.sqrt(3.0 / fan_in)
        tmp_w = jax.random.uniform(
            wkeys[i], (out_per_joint, len(expanded), kernel_size),
            minval=-w_bound, maxval=w_bound, dtype=jnp.float32)
        weight = weight.at[
            out_per_joint * i:out_per_joint * (i + 1),
            jnp.asarray(expanded), :].set(tmp_w)
        b_bound = 1.0 / math.sqrt(fan_in)
        tmp_b = jax.random.uniform(
            bkeys[i], (out_per_joint,), minval=-b_bound, maxval=b_bound,
            dtype=jnp.float32)
        bias = bias.at[out_per_joint * i:out_per_joint * (i + 1)].set(tmp_b)

    return weight, mask, bias


if __name__ == "__main__":
    key = jax.random.PRNGKey(0)
    k_param, k_x = jax.random.split(key)

    # Small shapes consistent with the module (args.swap_dim == 1 path):
    joint_num = 4
    in_per_joint, out_per_joint = 2, 3
    in_channels = joint_num * in_per_joint     # 8
    out_channels = joint_num * out_per_joint   # 12
    kernel_size = 3
    padding = 1
    stride = 1
    batch, length = 2, 16
    neighbour_list = [[0, 1], [0, 1, 2], [1, 2, 3], [2, 3]]

    weight, mask, bias = build_skeleton_params(
        k_param, neighbour_list, in_channels, out_channels,
        kernel_size, joint_num)
    weight_masked = weight * mask              # forward(): self.weight * self.mask

    x = jax.random.normal(k_x, (batch, in_channels, length),
                          dtype=jnp.float32)

    fwd = jax.jit(lambda xx, ww, bb: skeleton_conv_forward(
        xx, ww, bb, padding=padding, stride=stride))
    out = fwd(x, weight_masked, bias)
    out = jax.block_until_ready(out)

    # Pure-JAX reference (reflect pad + conv1d) for correctness.
    x_pad = jnp.pad(x, ((0, 0), (0, 0), (padding, padding)), mode="reflect")
    l_out = (length + 2 * padding - kernel_size) // stride + 1
    ref = jnp.zeros((batch, out_channels, l_out), jnp.float32)
    for kk in range(kernel_size):
        xk = x_pad[:, :, kk:kk + stride * (l_out - 1) + 1:stride]
        ref = ref + jnp.einsum("nci,oc->noi", xk, weight_masked[:, :, kk])
    ref = ref + bias[None, :, None]

    assert out.shape == (batch, out_channels, l_out)
    assert jnp.allclose(out, ref, atol=1e-5, rtol=1e-5)
    print("KERNEL_OK")
</pallas_src>

<mosaic_0001>
module attributes {stable_mosaic.version = 11 : i64} {
  func.func @kernel(%arg0: i32, %arg1: memref<2x18x8xf32, #tpu.memory_space<vmem>>, %arg2: memref<24x128xf32, #tpu.memory_space<vmem>>, %arg3: memref<1x128xf32, #tpu.memory_space<vmem>>, %arg4: memref<2x8x128xf32, #tpu.memory_space<vmem>>) attributes {dimension_semantics = [#tpu.dimension_semantics<parallel>], iteration_bounds = array<i64: 2>, scalar_prefetch = 0 : i64, scratch_operands = 0 : i64, tpu.core_type = #tpu.core_type<tc>, window_params = [{pipeline_mode = #tpu.pipeline_mode<synchronous>, transform_indices = @transform_0, window_bounds = array<i64: 2, 18, 8>}, {pipeline_mode = #tpu.pipeline_mode<synchronous>, transform_indices = @transform_1, window_bounds = array<i64: 24, 128>}, {pipeline_mode = #tpu.pipeline_mode<synchronous>, transform_indices = @transform_2, window_bounds = array<i64: 1, 128>}, {transform_indices = @transform_3, window_bounds = array<i64: 2, 8, 128>}]} {
    %c8_i32 = arith.constant 8 : i32
    %0 = arith.muli %arg0, %c8_i32 : i32
    %1 = tpu.assume_multiple %0, 8 : i32
    %c0 = arith.constant 0 : index
    %2 = arith.index_cast %1 : i32 to index
    %c0_0 = arith.constant 0 : index
    %3 = vector.load %arg1[%c0, %2, %c0_0] : memref<2x18x8xf32, #tpu.memory_space<vmem>>, vector<2x10x8xf32>
    %4 = vector.extract_strided_slice %3 {offsets = [0, 0, 0], sizes = [2, 8, 8], strides = [1, 1, 1]} : vector<2x10x8xf32> to vector<2x8x8xf32>
    %5 = vector.extract_strided_slice %3 {offsets = [0, 1, 0], sizes = [2, 8, 8], strides = [1, 1, 1]} : vector<2x10x8xf32> to vector<2x8x8xf32>
    %6 = vector.extract_strided_slice %3 {offsets = [0, 2, 0], sizes = [2, 8, 8], strides = [1, 1, 1]} : vector<2x10x8xf32> to vector<2x8x8xf32>
    %7 = tpu.concatenate %4, %5, %6 in 2 : vector<2x8x8xf32>, vector<2x8x8xf32>, vector<2x8x8xf32> -> vector<2x8x24xf32>
    %8 = vector.shape_cast %7 : vector<2x8x24xf32> to vector<16x24xf32>
    %c0_1 = arith.constant 0 : index
    %c0_2 = arith.constant 0 : index
    %9 = vector.load %arg2[%c0_1, %c0_2] : memref<24x128xf32, #tpu.memory_space<vmem>>, vector<24x128xf32>
    %cst = arith.constant dense<0.000000e+00> : vector<16x128xf32>
    %10 = tpu.matmul %8, %9, %cst {dimension_numbers = #tpu.dot_dimension_numbers<[1], [0], [0], [1], [0, 0, 1, 1], [], []>} : vector<16x24xf32>, vector<24x128xf32>, vector<16x128xf32> -> vector<16x128xf32>
    %c0_3 = arith.constant 0 : index
    %c0_4 = arith.constant 0 : index
    %11 = vector.load %arg3[%c0_3, %c0_4] : memref<1x128xf32, #tpu.memory_space<vmem>>, vector<1x128xf32>
    %12 = vector.broadcast %11 : vector<1x128xf32> to vector<16x128xf32>
    %13 = arith.addf %10, %12 : vector<16x128xf32>
    %14 = vector.shape_cast %13 : vector<16x128xf32> to vector<2x8x128xf32>
    %c0_5 = arith.constant 0 : index
    %c0_6 = arith.constant 0 : index
    %c0_7 = arith.constant 0 : index
    %15 = vector.load %arg4[%c0_5, %c0_6, %c0_7] : memref<2x8x128xf32, #tpu.memory_space<vmem>>, vector<2x8x128xf32>
    tpu.vector_store %arg4[%c0_5, %c0_6, %c0_7], %14 {strides = array<i32>} : memref<2x8x128xf32, #tpu.memory_space<vmem>>, vector<2x8x128xf32>,
    return
  }
  func.func @transform_0(%arg0: i32) -> (i32, i32, i32) {
    %c0_i32 = arith.constant 0 : i32
    %c0_i32_0 = arith.constant 0 : i32
    %c0_i32_1 = arith.constant 0 : i32
    %c0_i32_2 = arith.constant 0 : i32
    return %c0_i32, %c0_i32_0, %c0_i32_1 : i32, i32, i32
  }
  func.func @transform_1(%arg0: i32) -> (i32, i32) {
    %c0_i32 = arith.constant 0 : i32
    %c0_i32_0 = arith.constant 0 : i32
    %c0_i32_1 = arith.constant 0 : i32
    return %c0_i32, %c0_i32_0 : i32, i32
  }
  func.func @transform_2(%arg0: i32) -> (i32, i32) {
    %c0_i32 = arith.constant 0 : i32
    %c0_i32_0 = arith.constant 0 : i32
    %c0_i32_1 = arith.constant 0 : i32
    return %c0_i32, %c0_i32_0 : i32, i32
  }
  func.func @transform_3(%arg0: i32) -> (i32, i32, i32) {
    %c0_i32 = arith.constant 0 : i32
    %c0_i32_0 = arith.constant 0 : i32
    %c0_i32_1 = arith.constant 0 : i32
    return %c0_i32, %arg0, %c0_i32_0 : i32, i32, i32
  }
}

</mosaic_0001>

<bundles_post_ra>
// kernel: _lambda_.1
= control target key start
LH: loop header
LB: loop body
LE: loop exit
PB: predicated region body
PF: predicated region fallthrough
CT: control target
= control target key end

     0   :  { %s466_s12 = smov 0   ;;  %s468_s13 = smov 0   ;;  %s531_s0 = inlined_call_operand.vmem [shape: f32[2,18,8], index: 0, kind: input, shape index: {}]   ;;  %s532_s1 = inlined_call_operand.vmem [shape: f32[24,128], index: 1, kind: input, shape index: {}]   ;;  %s533_s2 = inlined_call_operand.vmem [shape: f32[1,128], index: 2, kind: input, shape index: {}]   ;;  %s534_s3 = inlined_call_operand.vmem [shape: f32[2,16,128], index: 3, kind: output, shape index: {}]  }
   0x1   :  { %s470_s14 = smov 0  }
   0x2 LB: > { %s367_s15 = sadd.s32 4294967295, %s442_s14   ;;  %s479_s16 = sadd.s32 1, %s442_s14   ;;  %s442_s14 = sphi %s470_s14, %s538_s14   ;;  %s438_s13 = sphi %s468_s13, %s537_s13   ;;  %s434_s12 = sphi %s466_s12, %s536_s12  }
   0x3   : > { %s80_s17 = ssub.s32 %s442_s14, %s479_s16  ;;  %s83_s18 = sadd.s32 1, %s438_s13 }
   0x4   : > { %p81_p0 = scmp.eq.s32.totalorder %s80_s17, 0  ;;  %p93_p1 = scmp.ne.s32.totalorder %s438_s13, %s434_s12 }
   0x5   : > { %p94_p2 = scmp.eq.s32.totalorder %s367_s15, 1  ;;  %p370_p3 = scmp.ge.s32.totalorder %s442_s14, 1 }
   0x6   : > { %s486_s19 = scalar_select %p81_p0, %s438_s13, %s83_s18  }
   0x7   : > { %p488_p4 = por %p94_p2, %p93_p1  ;;  %p127_p5 = scmp.lt.s32.totalorder %s442_s14, 3 }
   0x9   : > { %p128_p6 = pnand %p370_p3, %p127_p5 }
   0xa   : > { %s492_s21 = sshll.u32 (!%p128_p6), %s367_s15, 3  ;;  %s444_s4 = smov (!%p128_p6), 8  }
   0xb   : > { %131 = sbr.rel (%p128_p6) target bundleno = 348 (0x15c), region = 32  ;;  %s146_s26 = scalar_lea.vmem (!%p128_p6), %s531_s0, %s492_s21 }
   0xc   : > { %s445_s5 = smov (!%p128_p6), 16   ;;  %s142_s6 = sand.u32 (!%p128_p6), 1, %s434_s12  }
   0xd   : > { %s371_s7 = sshll.u32 (!%p128_p6), %s142_s6, 4 }
   0xe   : > { %s144_s10 = scalar_lea.vmem (!%p128_p6), [#allocation2], %s371_s7 }
  0x10   : > { %v189_v0 = vld [vmem:[%s532_s1 + $0x10] sm:$0xff]  ;;  %vm155_vm0 = vcmask 1046528   ;;  %v188_v1 = vld [vmem:[%s532_s1 + $0x8] sm:$0xff]  ;;  %v187_v2 = vld [vmem:[%s532_s1] sm:$0xff]  ;;  %vm168_vm1 = vcmask 1045504   ;;  %vm181_vm2 = vcmask 64512   ;;  %s289_s12 = scalar_lea.vmem (%p488_p4), %s534_s3, %s492_s21 }
  0x11   : > { %385 = vmatprep.subr.mxu0 %v189_v0  ;;  %v147_v3 = vld [vmem:[%s146_s26] sm:$0xff]  ;;  %v148_v4 = vld [vmem:[%s146_s26 + $0x8] sm:$0x3]  ;;  %v149_v5 = vld [vmem:[%s146_s26 + $0x18] sm:$0xff]  ;;  %vm184_vm3 = vcmask 130048   ;;  %vm197_vm4 = vcmask 195584  }
  0x12   : > { %386 = vmatpush3.msra.mxu0 %v189_v0  ;;  %v156_v6 = vrot.slane %v147_v3, 1  ;;  %v157_v7 = vrot.slane %v148_v4, 1  ;;  %v169_v8 = vrot.slane %v147_v3, 2  ;;  %v170_v9 = vrot.slane %v148_v4, 2  ;;  %v150_v10 = vld [vmem:[%s146_s26 + $0x20] sm:$0x3] }
  0x13   : > { %387 = vmatprep.subr.mxu0 %v188_v1  ;;  %v159_v11 = vrot.slane %v149_v5, 1  ;;  %v160_v12 = vrot.slane %v150_v10, 1  ;;  %v172_v13 = vrot.slane %v149_v5, 2  ;;  %v173_v14 = vrot.slane %v150_v10, 2  ;;  %v373_v27 = vld [vmem:[%s533_s2] ss:$0 sm:$0xff] }
  0x14   : > { %388 = vmatpush3.msra.mxu0 %v188_v1  ;;  %v158_v15 = vsel %vm155_vm0, %v156_v6, %v157_v7  ;;  %v171_v16 = vsel %vm168_vm1, %v169_v8, %v170_v9 }
  0x15   : > { %389 = vmatprep.subr.mxu0 %v187_v2  ;;  %162 = vrot.lane.b32.xlu0 %v158_v15, %s444_s4  ;;  %v161_v17 = vsel %vm155_vm0, %v159_v11, %v160_v12  ;;  %v174_v18 = vsel %vm168_vm1, %v172_v13, %v173_v14 }
  0x16   : > { %175 = vrot.lane.b32.xlu1 %v171_v16, %s445_s5  ;;  %390 = vmatpush3.msra.mxu0 %v187_v2 }
  0x19   : > { %164 = vrot.lane.b32.xlu0 %v161_v17, %s444_s4 }
  0x1a   : > { %177 = vrot.lane.b32.xlu1 %v174_v18, %s445_s5 }
  0x87   : > { %v163_v19 = vpop.permute.xlu0 %162 }
  0x88   : > { %v176_v20 = vpop.permute.xlu1 %175  ;;  %v182_v21 = vsel %vm181_vm2, %v147_v3, %v163_v19 }
  0x89   : > { %v185_v22 = vsel %vm184_vm3, %v182_v21, %v176_v20 }
  0x8a   : > { %391 = vmatprep.mubr.msk.f32.mxu0 %vm197_vm4, %v185_v22 }
  0x8b   : > { %v165_v23 = vpop.permute.xlu0 %164 }
  0x8c   : > { %v178_v24 = vpop.permute.xlu1 %177  ;;  %v183_v25 = vsel %vm181_vm2, %v149_v5, %v165_v23 }
  0x8d   : > { %v186_v26 = vsel %vm184_vm3, %v183_v25, %v178_v24 }
  0x8e   : > { %392 = vmatmul.mubr.msk.f32.vlgmr.msra.gmra.mxu0 %vm197_vm4, %v186_v26 }
 0x14e   : > { %v393_v28 = vpop.f32.mrf.mxu0 }
 0x14f   : > { %v276_v29 = vadd.f32 %v393_v28, %v373_v27  ;;  %287 = sbr.rel (!%p488_p4) target bundleno = 348 (0x15c), region = 36 }
 0x150   : > { %v270_v30 = vpop.f32.mrf.mxu0 }
 0x151   : > { %280 = vst [vmem:[%s144_s10 + $0x8] sm:$0xff] %v276_v29  ;;  %v271_v31 = vadd.f32 %v373_v27, %v270_v30 }
 0x153   : > { %279 = vst [vmem:[%s144_s10] sm:$0xff] %v271_v31 }
 0x158   : > { %v322_v33 = vld [vmem:[%s144_s10 + $0x8] sm:$0xff] }
 0x159   : > { %323 = vst [vmem:[%s289_s12 + $0x10] sm:$0xff] %v322_v33 }
 0x15a   : > { %v320_v32 = vld [vmem:[%s144_s10] sm:$0xff] }
 0x15b   : > { %321 = vst [vmem:[%s289_s12] sm:$0xff] %v320_v32 }
 0x15c PF: > { %p10_p7 = scmp.ge.s32.totalorder %s479_s16, 4   ;;  %s536_s12 = smov %s438_s13 }
 0x15d   : > { %s537_s13 = smov %s486_s19  ;;  %s538_s14 = smov %s479_s16 }
 0x15e   :  { %12 = sbr.rel (!%p10_p7) target bundleno = 2 (0x2), region = 98 }

</bundles_post_ra>
